<compile_context>
chip_gen: v5e
topology: v5e:2x2
jax: 0.10.0
libtpu: 0.0.40
codegen_flags: <defaults>
</compile_context>

<pallas_src>
import jax
import jax.numpy as jnp
from jax.experimental import pallas as pl
from jax.experimental.pallas import tpu as pltpu


def _threshold_kernel(thr_ref, x_ref, o_ref):
    """Elementwise (x > threshold) -> o_ref.dtype (default f32, like .float())."""
    thr = thr_ref[0, 0]  # float32 scalar held in SMEM
    x = x_ref[...]
    if jnp.issubdtype(x_ref.dtype, jnp.integer):
        # Promote integer inputs to f32 for the compare (PyTorch promotes an
        # int tensor vs python-float comparison to float; casting thr to int
        # would truncate 0.5 -> 0).
        cmp = x.astype(jnp.float32) > thr
    else:
        # For floating inputs, cast thr to x.dtype (matches PyTorch's scalar
        # wrapping semantics, incl. bf16 rounding).
        cmp = x > thr.astype(x.dtype)
    o_ref[...] = cmp.astype(o_ref.dtype)


def _tpu_defaults():
    """(target_input_block_bytes, vmem_limit_bytes) per TPU generation."""
    try:
        kind = jax.devices()[0].device_kind.lower()
    except Exception:  # pragma: no cover - defensive only
        kind = ""
    if "v7" in kind:
        # 64 MiB physical VMEM per TC: bigger blocks (3.2 TB/s makes the
        # ~0.35us per-step overhead visible), but leave headroom.
        return 6 * 2**20, 48 * 2**20
    if "v6" in kind:
        return 4 * 2**20, 48 * 2**20
    # v5e / v5p / v4 / unknown: 2 MiB blocks already hide the step overhead.
    return 2 * 2**20, 32 * 2**20


def _threshold_pallas_aligned(x_flat, thr_arr, out_dtype,
                              target_block_bytes, vmem_limit_bytes):
    """Run the kernel on a flat array whose length is a multiple of 128."""
    n = x_flat.size

    # Widest lane-dense width (multiple of 128) that divides n exactly.
    width = 128
    for w in (1024, 512, 256, 128):
        if n % w == 0:
            width = w
            break
    rows = n // width
    x2d = x_flat.reshape(rows, width)

    in_itemsize = x_flat.dtype.itemsize
    out_itemsize = jnp.dtype(out_dtype).itemsize

    # Block sizing: respect both the per-generation target input-block size and
    # the true resident footprint (double-buffered input + output blocks).
    bytes_per_row_in = width * in_itemsize
    bytes_per_row_resident = 2 * width * (in_itemsize + out_itemsize)
    resident_budget = int(vmem_limit_bytes * 0.75)  # headroom for Mosaic scratch
    rows_by_target = max(1, target_block_bytes // bytes_per_row_in)
    rows_by_vmem = max(1, resident_budget // bytes_per_row_resident)
    rows_per_block = min(rows_by_target, rows_by_vmem)

    # Round to the sublane packing of the narrower dtype (8 f32 / 16 bf16 /
    # 32 int8-class). A full-extent block is always legal regardless.
    packing = max(8, 32 // in_itemsize, 32 // out_itemsize)
    if rows <= rows_per_block:
        block_rows = rows
    else:
        block_rows = max(packing, (rows_per_block // packing) * packing)

    grid = (pl.cdiv(rows, block_rows),)

    out2d = pl.pallas_call(
        _threshold_kernel,
        out_shape=jax.ShapeDtypeStruct((rows, width), out_dtype),
        grid=grid,
        in_specs=[
            pl.BlockSpec(memory_space=pltpu.MemorySpace.SMEM),   # threshold
            pl.BlockSpec((block_rows, width), lambda i: (i, 0)),  # x tile
        ],
        out_specs=pl.BlockSpec((block_rows, width), lambda i: (i, 0)),
        compiler_params=pltpu.CompilerParams(
            dimension_semantics=("parallel",),
            vmem_limit_bytes=vmem_limit_bytes,
        ),
    )(thr_arr, x2d)
    return out2d.reshape(-1)


def threshold_taker(x, threshold, *, out_dtype=jnp.float32,
                    min_pallas_bytes=1 << 20,
                    target_block_bytes=None, vmem_limit_bytes=None):
    """Pallas TPU implementation of ThresholdTaker.forward.

    A falsy *Python* threshold (None / 0 / 0.0 / False) -> identity, matching
    PyTorch `if self.threshold:`. This truthiness branch is static; a
    traced/jnp threshold is not supported there (same limitation as the
    original nn.Module, whose branch is also a host-side Python check).
    Otherwise returns (x > threshold) cast to `out_dtype` (f32 by default,
    matching `.float()`; bf16 can be requested to cut write traffic).
    """
    if not threshold:
        return x

    def _xla(v):
        # Fused XLA fallback / tail handler (exact same semantics as kernel).
        if jnp.issubdtype(v.dtype, jnp.integer):
            return (v.astype(jnp.float32) > jnp.float32(threshold)).astype(out_dtype)
        return (v > jnp.asarray(threshold, dtype=v.dtype)).astype(out_dtype)

    n = x.size
    if n == 0 or n * x.dtype.itemsize < min_pallas_bytes:
        # Tiny activations: pallas_call launch + un-fusable HBM round trip
        # would dominate; a fused XLA elementwise op is strictly faster.
        return _xla(x)

    if target_block_bytes is None or vmem_limit_bytes is None:
        default_blk, default_vmem = _tpu_defaults()
        if target_block_bytes is None:
            target_block_bytes = default_blk
        if vmem_limit_bytes is None:
            vmem_limit_bytes = default_vmem

    thr_arr = jnp.full((1, 1), threshold, dtype=jnp.float32)
    x_flat = jnp.ravel(x)
    n_bulk = (n // 128) * 128

    if n_bulk == n:
        # Common case (activations with size % 128 == 0): no pad, no tail.
        out_flat = _threshold_pallas_aligned(
            x_flat, thr_arr, out_dtype, target_block_bytes, vmem_limit_bytes)
    elif n_bulk == 0:
        return _xla(x)
    else:
        # Ragged: kernel on the 128-aligned bulk, plain jnp on the <128 tail.
        bulk_out = _threshold_pallas_aligned(
            x_flat[:n_bulk], thr_arr, out_dtype,
            target_block_bytes, vmem_limit_bytes)
        tail_out = _xla(x_flat[n_bulk:])
        out_flat = jnp.concatenate([bulk_out, tail_out])

    return out_flat.reshape(x.shape)


if __name__ == "__main__":
    key = jax.random.PRNGKey(0)
    threshold = 0.5

    # 1) Small NCHW input -> default path takes the fused-XLA small-input fallback.
    x_small = jax.random.normal(key, (2, 4, 16, 16), dtype=jnp.float32)
    out_small = jax.block_until_ready(threshold_taker(x_small, threshold))
    ref_small = (x_small > threshold).astype(jnp.float32)
    assert out_small.shape == x_small.shape and out_small.dtype == jnp.float32
    assert bool(jnp.all(out_small == ref_small))

    # 2) Same input forced through the Pallas kernel (compile + run the kernel).
    out_forced = jax.block_until_ready(
        threshold_taker(x_small, threshold, min_pallas_bytes=0))
    assert out_forced.dtype == jnp.float32
    assert bool(jnp.all(out_forced == ref_small))

    # 3) Segmentation-sized logits: default path uses the Pallas kernel.
    x_big = jax.random.normal(jax.random.PRNGKey(1), (2, 4, 256, 256),
                              dtype=jnp.float32)
    out_big = jax.block_until_ready(threshold_taker(x_big, threshold))
    ref_big = (x_big > threshold).astype(jnp.float32)
    assert bool(jnp.all(out_big == ref_big))

    # 4) Ragged size -> 128-aligned bulk through the kernel + tiny jnp tail.
    x_rag = jax.random.normal(jax.random.PRNGKey(2), (3, 5, 7, 11),
                              dtype=jnp.float32)
    out_rag = jax.block_until_ready(
        threshold_taker(x_rag, threshold, min_pallas_bytes=0))
    ref_rag = (x_rag > threshold).astype(jnp.float32)
    assert out_rag.shape == x_rag.shape
    assert bool(jnp.all(out_rag == ref_rag))

    # 5) Integer input: compare is done in f32 (threshold must not truncate).
    x_int = jax.random.randint(jax.random.PRNGKey(3), (4, 64, 64), 0, 3,
                               dtype=jnp.int32)
    out_int = jax.block_until_ready(
        threshold_taker(x_int, 1.5, min_pallas_bytes=0))
    ref_int = (x_int.astype(jnp.float32) > 1.5).astype(jnp.float32)
    assert bool(jnp.all(out_int == ref_int))

    # 6) Falsy threshold -> identity (matches PyTorch `if self.threshold:`).
    out_id = threshold_taker(x_small, 0.0)
    assert bool(jnp.all(out_id == x_small))

    print("KERNEL_OK")
</pallas_src>

<mosaic_0001>
module attributes {stable_mosaic.version = 11 : i64} {
  func.func @_threshold_kernel(%arg0: i32, %arg1: memref<1x1xf32, #tpu.memory_space<smem>>, %arg2: memref<2x1024xf32, #tpu.memory_space<vmem>>, %arg3: memref<2x1024xf32, #tpu.memory_space<vmem>>) attributes {dimension_semantics = [#tpu.dimension_semantics<parallel>], iteration_bounds = array<i64: 1>, scalar_prefetch = 0 : i64, scratch_operands = 0 : i64, tpu.core_type = #tpu.core_type<tc>, window_params = [{transform_indices = @transform_0, window_bounds = array<i64: 1, 1>}, {transform_indices = @transform_1, window_bounds = array<i64: 2, 1024>}, {transform_indices = @transform_2, window_bounds = array<i64: 2, 1024>}]} {
    %c0 = arith.constant 0 : index
    %c0_0 = arith.constant 0 : index
    %0 = memref.load %arg1[%c0, %c0_0] : memref<1x1xf32, #tpu.memory_space<smem>>
    %c0_1 = arith.constant 0 : index
    %c0_2 = arith.constant 0 : index
    %1 = vector.load %arg2[%c0_1, %c0_2] : memref<2x1024xf32, #tpu.memory_space<vmem>>, vector<2x1024xf32>
    %2 = vector.broadcast %0 : f32 to vector<2x1024xf32>
    %3 = arith.cmpf ogt, %1, %2 : vector<2x1024xf32>
    %4 = arith.extui %3 : vector<2x1024xi1> to vector<2x1024xi32>
    %5 = arith.sitofp %4 : vector<2x1024xi32> to vector<2x1024xf32>
    %c0_3 = arith.constant 0 : index
    %c0_4 = arith.constant 0 : index
    %6 = vector.load %arg3[%c0_3, %c0_4] : memref<2x1024xf32, #tpu.memory_space<vmem>>, vector<2x1024xf32>
    tpu.vector_store %arg3[%c0_3, %c0_4], %5 {strides = array<i32>} : memref<2x1024xf32, #tpu.memory_space<vmem>>, vector<2x1024xf32>,
    return
  }
  func.func @transform_0(%arg0: i32) -> (i32, i32) {
    %c0_i32 = arith.constant 0 : i32
    %c0_i32_0 = arith.constant 0 : i32
    %c0_i32_1 = arith.constant 0 : i32
    return %c0_i32, %c0_i32_0 : i32, i32
  }
  func.func @transform_1(%arg0: i32) -> (i32, i32) {
    %c0_i32 = arith.constant 0 : i32
    %c0_i32_0 = arith.constant 0 : i32
    return %arg0, %c0_i32 : i32, i32
  }
  func.func @transform_2(%arg0: i32) -> (i32, i32) {
    %c0_i32 = arith.constant 0 : i32
    %c0_i32_0 = arith.constant 0 : i32
    return %arg0, %c0_i32 : i32, i32
  }
}

</mosaic_0001>

<bundles_post_ra>
// kernel: tpu_custom_call.1
= control target key start
LH: loop header
LB: loop body
LE: loop exit
PB: predicated region body
PF: predicated region fallthrough
CT: control target
= control target key end

     0   :  { %8 = vsyncpa [#allocation4], 0  ;;  %s140_s0 = inlined_call_operand.<no memory space> [shape: f32[1,1], index: 0, kind: input, shape index: {}]   ;;  %s141_s1 = inlined_call_operand.hbm [shape: f32[2,1024], index: 1, kind: input, shape index: {}]   ;;  %s142_s2 = inlined_call_operand.hbm [shape: f32[2,1024], index: 2, kind: output, shape index: {}]  }
   0x1   :  { %9 = vsyncpa [#allocation5], 0  ;;  %s17_s11 = sshll.u32 %s141_s1, 4  ;;  %s113_s12 = smov [#allocation3]   ;;  %s18_s11 = int_to_ptr.hbm [resolvable:$true] %s17_s11 }
   0x2   :  { %s19_s13 = sshll.u32 %s113_s12, 4  ;;  %s20_s13 = int_to_ptr.vmem [resolvable:$true] %s19_s13 }
   0x3   :  { %22 = dma.hbm_to_vmem [thread:$0]  %s18_s11, 256, %s20_s13, [#allocation4]  }
   0x4   :  { %109 = dma.done.wait [#allocation4], 256  }
   0x5   :  { %110 = vsyncadd [#allocation4], 4294967040  ;;  %v30_v0 = vstv %s140_s0  ;;  %s114_s16 = smov [#allocation6]   ;;  %s46_s20 = sshll.u32 %s142_s2, 4  ;;  %v28_v1 = vld [vmem:[#allocation3] sm:$0xff]  ;;  %v29_v2 = vld [vmem:[#allocation3 + $0x8] sm:$0xff]  ;;  %s47_s20 = int_to_ptr.hbm [resolvable:$true] %s46_s20 }
   0x6   :  { %s44_s17 = sshll.u32 %s114_s16, 4  ;;  %vm31_vm0 = vcmp.gt.f32.partialorder %v28_v1, %v30_v0  ;;  %vm32_vm1 = vcmp.gt.f32.partialorder %v29_v2, %v30_v0  ;;  %v115_v3 = vmov 0.0   ;;  %s45_s17 = int_to_ptr.vmem [resolvable:$true] %s44_s17 }
   0x7   :  { %v56_v4 = vsel %vm31_vm0, 1.0, %v115_v3  ;;  %v57_v5 = vsel %vm32_vm1, 1.0, %v115_v3 }
   0x8   :  { %37 = vst [vmem:[#allocation6] sm:$0xff] %v56_v4 }
   0x9   :  { %38 = vst [vmem:[#allocation6 + $0x8] sm:$0xff] %v57_v5 }
   0xa   :  { %49 = dma.vmem_to_hbm [thread:$0]  %s45_s17, 256, %s47_s20, [#allocation5]  }
   0xb   :  { %111 = dma.done.wait [#allocation5], 256  }
   0xc   :  { %112 = vsyncadd [#allocation5], 4294967040 }
   0xd   :  { %54 = vsyncpa [#allocation4], 1 }
   0xe   :  { %55 = vsyncpa [#allocation5], 1 }

</bundles_post_ra>
